<compile_context>
chip_gen: v5e
topology: v5e:2x2
jax: 0.10.0
libtpu: 0.0.40
codegen_flags: <defaults>
</compile_context>

<pallas_src>
import functools

import jax
import jax.numpy as jnp
from jax.experimental import pallas as pl
from jax.experimental.pallas import tpu as pltpu

_VMEM_LIMIT = 32 * 1024 * 1024  # explicit scoped-VMEM budget, safe on v5e/v6e/v7x


def _row_tile(n, target=256):
    """Largest divisor of n that is <= target (degenerates to n for small n)."""
    t = min(n, target)
    while n % t:
        t -= 1
    return t


# ----------------------------- Pallas kernels -----------------------------

def _self_attn_block_kernel(h_ref, ln_ref, wqkv_ref, wo_ref, mask_ref, pbias_ref,
                            o_ref, *, n_heads, d_head):
    """Fused: RMSNorm -> QKV proj -> attention (+mask +pos bias) -> out proj -> residual."""
    h = h_ref[0]                                            # (S, D) f32
    # T5 RMSNorm (no mean subtraction, no bias, eps=1e-6)
    var = jnp.mean(h * h, axis=-1, keepdims=True)
    x = h * jax.lax.rsqrt(var + 1e-6) * ln_ref[...]
    # Fused QKV projection: bf16 MXU inputs, f32 accumulation.
    qkv = jnp.dot(x.astype(jnp.bfloat16), wqkv_ref[...],
                  preferred_element_type=jnp.float32)       # (S, 3*inner)
    inner = n_heads * d_head
    q = qkv[:, :inner]
    k = qkv[:, inner:2 * inner]
    v = qkv[:, 2 * inner:]
    mask = mask_ref[0]                                      # (S, S) additive
    out = None
    for hd in range(n_heads):                               # static unroll over heads
        lo, hi = hd * d_head, (hd + 1) * d_head
        qh = q[:, lo:hi].astype(jnp.bfloat16)
        kh = k[:, lo:hi].astype(jnp.bfloat16)
        vh = v[:, lo:hi].astype(jnp.bfloat16)
        # T5 / EVA: no 1/sqrt(d_head) scaling of attention scores.
        scores = jax.lax.dot_general(qh, kh, (((1,), (1,)), ((), ())),
                                     preferred_element_type=jnp.float32)
        scores = scores + mask + pbias_ref[hd]              # add biases in-kernel
        m = jnp.max(scores, axis=-1, keepdims=True)
        p = jnp.exp(scores - m)
        probs = p / jnp.sum(p, axis=-1, keepdims=True)
        ctx_h = jnp.dot(probs.astype(jnp.bfloat16), vh,
                        preferred_element_type=jnp.float32)  # (S, Dh)
        # ctx @ wo == sum_h ctx_h @ wo[h*Dh:(h+1)*Dh, :]  (avoids in-kernel concat)
        part = jnp.dot(ctx_h.astype(jnp.bfloat16), wo_ref[lo:hi, :],
                       preferred_element_type=jnp.float32)   # (S, D)
        out = part if out is None else out + part
    o_ref[0] = h + out                                      # residual add


def _cross_attn_block_kernel(h_ref, enc_ref, ln_ref, wq_ref, wkv_ref, wo_ref,
                             mask_ref, o_ref, *, n_heads, d_head):
    """Fused: RMSNorm -> Q / fused KV proj -> attention (+mask) -> out proj -> residual."""
    h = h_ref[0]                                            # (Sd, D) f32
    enc = enc_ref[0]                                        # (Se, D) f32
    var = jnp.mean(h * h, axis=-1, keepdims=True)
    x = h * jax.lax.rsqrt(var + 1e-6) * ln_ref[...]
    q_all = jnp.dot(x.astype(jnp.bfloat16), wq_ref[...],
                    preferred_element_type=jnp.float32)     # (Sd, inner)
    kv = jnp.dot(enc.astype(jnp.bfloat16), wkv_ref[...],
                 preferred_element_type=jnp.float32)        # (Se, 2*inner)
    inner = n_heads * d_head
    k_all = kv[:, :inner]
    v_all = kv[:, inner:]
    mask = mask_ref[0]                                      # (Sd, Se)
    out = None
    for hd in range(n_heads):
        lo, hi = hd * d_head, (hd + 1) * d_head
        qh = q_all[:, lo:hi].astype(jnp.bfloat16)
        kh = k_all[:, lo:hi].astype(jnp.bfloat16)
        vh = v_all[:, lo:hi].astype(jnp.bfloat16)
        scores = jax.lax.dot_general(qh, kh, (((1,), (1,)), ((), ())),
                                     preferred_element_type=jnp.float32)
        scores = scores + mask
        m = jnp.max(scores, axis=-1, keepdims=True)
        p = jnp.exp(scores - m)
        probs = p / jnp.sum(p, axis=-1, keepdims=True)
        ctx_h = jnp.dot(probs.astype(jnp.bfloat16), vh,
                        preferred_element_type=jnp.float32)
        part = jnp.dot(ctx_h.astype(jnp.bfloat16), wo_ref[lo:hi, :],
                       preferred_element_type=jnp.float32)
        out = part if out is None else out + part
    o_ref[0] = h + out


def _ffn_block_kernel(h_ref, ln_ref, wi_ref, wo_ref, o_ref):
    """Fused: RMSNorm -> ReLU FFN (T5 DenseReluDense) -> residual."""
    h = h_ref[...]                                          # (TM, D) f32
    var = jnp.mean(h * h, axis=-1, keepdims=True)
    x = h * jax.lax.rsqrt(var + 1e-6) * ln_ref[...]
    mid = jnp.dot(x.astype(jnp.bfloat16), wi_ref[...],
                  preferred_element_type=jnp.float32)
    mid = jnp.maximum(mid, 0.0)
    out = jnp.dot(mid.astype(jnp.bfloat16), wo_ref[...],
                  preferred_element_type=jnp.float32)
    o_ref[...] = h + out


def _rmsnorm_kernel(x_ref, w_ref, o_ref):
    x = x_ref[...]
    var = jnp.mean(x * x, axis=-1, keepdims=True)
    o_ref[...] = x * jax.lax.rsqrt(var + 1e-6) * w_ref[...]


def _lm_head_kernel(x_ref, w_ref, o_ref):
    o_ref[...] = jnp.dot(x_ref[...].astype(jnp.bfloat16), w_ref[...],
                         preferred_element_type=jnp.float32)


# ----------------------------- pallas_call wrappers -----------------------------

def fused_self_attn_block(h, ln_w, wqkv, wo, mask_bias, pos_bias, n_heads, d_head):
    """h:(B,S,D) f32; wqkv:(D,3*inner) bf16; wo:(inner,D) bf16; mask:(B,S,S); pos:(H,S,S)."""
    B, S, D = h.shape
    inner = n_heads * d_head
    kern = functools.partial(_self_attn_block_kernel, n_heads=n_heads, d_head=d_head)
    return pl.pallas_call(
        kern,
        grid=(B,),
        in_specs=[pl.BlockSpec((1, S, D), lambda b: (b, 0, 0)),
                  pl.BlockSpec((1, D), lambda b: (0, 0)),
                  pl.BlockSpec((D, 3 * inner), lambda b: (0, 0)),
                  pl.BlockSpec((inner, D), lambda b: (0, 0)),
                  pl.BlockSpec((1, S, S), lambda b: (b, 0, 0)),
                  pl.BlockSpec((n_heads, S, S), lambda b: (0, 0, 0))],
        out_specs=pl.BlockSpec((1, S, D), lambda b: (b, 0, 0)),
        out_shape=jax.ShapeDtypeStruct((B, S, D), jnp.float32),
        compiler_params=pltpu.CompilerParams(
            dimension_semantics=("parallel",), vmem_limit_bytes=_VMEM_LIMIT),
    )(h, ln_w.reshape(1, D), wqkv, wo, mask_bias, pos_bias)


def fused_cross_attn_block(h, enc_h, ln_w, wq, wkv, wo, mask_bias, n_heads, d_head):
    B, Sd, D = h.shape
    Se = enc_h.shape[1]
    inner = n_heads * d_head
    kern = functools.partial(_cross_attn_block_kernel, n_heads=n_heads, d_head=d_head)
    return pl.pallas_call(
        kern,
        grid=(B,),
        in_specs=[pl.BlockSpec((1, Sd, D), lambda b: (b, 0, 0)),
                  pl.BlockSpec((1, Se, D), lambda b: (b, 0, 0)),
                  pl.BlockSpec((1, D), lambda b: (0, 0)),
                  pl.BlockSpec((D, inner), lambda b: (0, 0)),
                  pl.BlockSpec((D, 2 * inner), lambda b: (0, 0)),
                  pl.BlockSpec((inner, D), lambda b: (0, 0)),
                  pl.BlockSpec((1, Sd, Se), lambda b: (b, 0, 0))],
        out_specs=pl.BlockSpec((1, Sd, D), lambda b: (b, 0, 0)),
        out_shape=jax.ShapeDtypeStruct((B, Sd, D), jnp.float32),
        compiler_params=pltpu.CompilerParams(
            dimension_semantics=("parallel",), vmem_limit_bytes=_VMEM_LIMIT),
    )(h, enc_h, ln_w.reshape(1, D), wq, wkv, wo, mask_bias)


def fused_ffn_block(h, ln_w, wi, wo):
    B, S, D = h.shape
    M = B * S
    Fdim = wi.shape[1]
    TM = _row_tile(M)
    out = pl.pallas_call(
        _ffn_block_kernel,
        grid=(M // TM,),
        in_specs=[pl.BlockSpec((TM, D), lambda i: (i, 0)),
                  pl.BlockSpec((1, D), lambda i: (0, 0)),
                  pl.BlockSpec((D, Fdim), lambda i: (0, 0)),
                  pl.BlockSpec((Fdim, D), lambda i: (0, 0))],
        out_specs=pl.BlockSpec((TM, D), lambda i: (i, 0)),
        out_shape=jax.ShapeDtypeStruct((M, D), jnp.float32),
        compiler_params=pltpu.CompilerParams(
            dimension_semantics=("parallel",), vmem_limit_bytes=_VMEM_LIMIT),
    )(h.reshape(M, D), ln_w.reshape(1, D), wi, wo)
    return out.reshape(B, S, D)


def pallas_rmsnorm(h, w):
    """Final stack RMSNorm. h:(B,S,D), w:(D,)."""
    B, S, D = h.shape
    M = B * S
    TM = _row_tile(M)
    out = pl.pallas_call(
        _rmsnorm_kernel,
        grid=(M // TM,),
        in_specs=[pl.BlockSpec((TM, D), lambda i: (i, 0)),
                  pl.BlockSpec((1, D), lambda i: (0, 0))],
        out_specs=pl.BlockSpec((TM, D), lambda i: (i, 0)),
        out_shape=jax.ShapeDtypeStruct((M, D), jnp.float32),
        compiler_params=pltpu.CompilerParams(
            dimension_semantics=("parallel",), vmem_limit_bytes=_VMEM_LIMIT),
    )(h.reshape(M, D), w.reshape(1, D))
    return out.reshape(B, S, D)


def pallas_lm_head(x2d, w_t):
    """logits = x2d @ w_t. x2d:(M,D) f32; w_t:(D,V) bf16 (pre-transposed lm_head)."""
    M, D = x2d.shape
    V = w_t.shape[1]
    TM = _row_tile(M, 256)
    TN = _row_tile(V, 2048)
    # TODO(synk): for production d_model (2-4K) add a K grid axis + f32 accumulator scratch.
    return pl.pallas_call(
        _lm_head_kernel,
        grid=(M // TM, V // TN),
        in_specs=[pl.BlockSpec((TM, D), lambda i, j: (i, 0)),
                  pl.BlockSpec((D, TN), lambda i, j: (0, j))],
        out_specs=pl.BlockSpec((TM, TN), lambda i, j: (i, j)),
        out_shape=jax.ShapeDtypeStruct((M, V), jnp.float32),
        compiler_params=pltpu.CompilerParams(
            dimension_semantics=("parallel", "parallel"), vmem_limit_bytes=_VMEM_LIMIT),
    )(x2d, w_t)


# ----------------------------- JAX glue (model) -----------------------------

def _relative_position_bucket(relative_position, bidirectional, num_buckets, max_distance):
    ret = jnp.zeros_like(relative_position)
    n = -relative_position
    if bidirectional:
        num_buckets //= 2
        ret = ret + (n < 0).astype(jnp.int32) * num_buckets
        n = jnp.abs(n)
    else:
        n = jnp.maximum(n, 0)
    max_exact = num_buckets // 2
    is_small = n < max_exact
    n_safe = jnp.maximum(n, 1).astype(jnp.float32)
    val_if_large = max_exact + (
        jnp.log(n_safe / max_exact) / jnp.log(max_distance / max_exact)
        * (num_buckets - max_exact)
    ).astype(jnp.int32)
    val_if_large = jnp.minimum(val_if_large, num_buckets - 1)
    return ret + jnp.where(is_small, n, val_if_large)


def compute_rel_bias(rel_emb, q_len, k_len, bidirectional, num_buckets, max_distance):
    ctx = jnp.arange(q_len, dtype=jnp.int32)[:, None]
    mem = jnp.arange(k_len, dtype=jnp.int32)[None, :]
    rel_pos = mem - ctx
    buckets = _relative_position_bucket(rel_pos, bidirectional, num_buckets, max_distance)
    bias = rel_emb[buckets]                  # (q, k, H)
    return jnp.transpose(bias, (2, 0, 1)).astype(jnp.float32)   # (H, q, k)


def encoder_forward(params, cfg, input_ids, attention_mask):
    # TODO(synk): embedding gather stays in XLA (data-dependent row gather).
    h = params['word_embeds'][input_ids].astype(jnp.float32)    # (B, S, D)
    B, S, _ = h.shape
    mask_bias = ((1.0 - attention_mask) * -10000.0).reshape(B, S, S)
    pos_bias = compute_rel_bias(params['enc_rel_bias'], S, S, True,
                                cfg['rel_buckets'], cfg['rel_max_dist'])
    for lyr in params['enc_layers']:
        h = fused_self_attn_block(h, lyr['ln1'], lyr['self_attn']['wqkv'],
                                  lyr['self_attn']['wo'], mask_bias, pos_bias,
                                  cfg['n_heads'], cfg['d_kv'])
        h = fused_ffn_block(h, lyr['ln2'], lyr['ff_wi'], lyr['ff_wo'])
    return pallas_rmsnorm(h, params['enc_final_ln'])


def decoder_forward(params, cfg, input_ids, attention_mask, cross_attention_mask,
                    enc_hidden_states):
    h = params['word_embeds'][input_ids].astype(jnp.float32)
    B, S, _ = h.shape
    Se = enc_hidden_states.shape[1]
    self_mask = ((1.0 - attention_mask) * -10000.0).reshape(B, S, S)          # causal
    cross_mask = ((1.0 - cross_attention_mask) * -10000.0).reshape(B, S, Se)
    pos_bias = compute_rel_bias(params['dec_rel_bias'], S, S, False,
                                cfg['rel_buckets'], cfg['rel_max_dist'])
    for lyr in params['dec_layers']:
        h = fused_self_attn_block(h, lyr['ln1'], lyr['self_attn']['wqkv'],
                                  lyr['self_attn']['wo'], self_mask, pos_bias,
                                  cfg['n_heads'], cfg['d_kv'])
        h = fused_cross_attn_block(h, enc_hidden_states, lyr['ln2'],
                                   lyr['cross_attn']['wq'], lyr['cross_attn']['wkv'],
                                   lyr['cross_attn']['wo'], cross_mask,
                                   cfg['n_heads'], cfg['d_kv'])
        h = fused_ffn_block(h, lyr['ln3'], lyr['ff_wi'], lyr['ff_wo'])
    return pallas_rmsnorm(h, params['dec_final_ln'])


def encdec_forward(params, cfg,
                   enc_input_ids=None, enc_position_ids=None, enc_attention_mask=None,
                   dec_input_ids=None, dec_position_ids=None, dec_attention_mask=None,
                   cross_attention_mask=None):
    # position_ids accepted for signature parity but unused (relative position bias).
    enc_h = encoder_forward(params, cfg, enc_input_ids, enc_attention_mask)
    dec_h = decoder_forward(params, cfg, dec_input_ids, dec_attention_mask,
                            cross_attention_mask, enc_h)
    B, Sd, D = dec_h.shape
    # F.linear(h, lm_head.weight) == h @ lm_head.weight.T; weight stored pre-transposed.
    logits = pallas_lm_head(dec_h.reshape(B * Sd, D),
                            params['lm_head_T']).reshape(B, Sd, cfg['vocab'])
    return {
        'lm_logits': logits,
        'last_hidden_state': dec_h,
        'past_key_values': None,
        'decoder_hidden_states': None,
        'decoder_attentions': None,
        'cross_attentions': None,
        'encoder_last_hidden_state': enc_h,
        'encoder_hidden_states': None,
        'encoder_attentions': None,
    }


# ----------------------------- parameter init -----------------------------

def init_params(key, cfg):
    D, H, Dk, Fdim = cfg['d_model'], cfg['n_heads'], cfg['d_kv'], cfg['d_ff']
    inner = H * Dk
    keys = iter(jax.random.split(key, 512))

    def nrm(shape, std=0.02, dtype=jnp.bfloat16):
        return (std * jax.random.normal(next(keys), shape)).astype(dtype)

    def self_attn_params():
        # Fused QKV weight (D, 3*inner) = concat(wq, wk, wv) along the output dim.
        return {'wqkv': jnp.concatenate(
                    [nrm((D, inner)), nrm((D, inner)), nrm((D, inner))], axis=1),
                'wo': nrm((inner, D))}

    def cross_attn_params():
        return {'wq': nrm((D, inner)),
                'wkv': jnp.concatenate([nrm((D, inner)), nrm((D, inner))], axis=1),
                'wo': nrm((inner, D))}

    def enc_layer():
        return {'ln1': jnp.ones((D,), jnp.float32), 'self_attn': self_attn_params(),
                'ln2': jnp.ones((D,), jnp.float32),
                'ff_wi': nrm((D, Fdim)), 'ff_wo': nrm((Fdim, D))}

    def dec_layer():
        return {'ln1': jnp.ones((D,), jnp.float32), 'self_attn': self_attn_params(),
                'ln2': jnp.ones((D,), jnp.float32), 'cross_attn': cross_attn_params(),
                'ln3': jnp.ones((D,), jnp.float32),
                'ff_wi': nrm((D, Fdim)), 'ff_wo': nrm((Fdim, D))}

    lm_head = nrm((cfg['vocab'], D), std=0.02, dtype=jnp.float32)  # init_method_std
    return {
        'word_embeds': nrm((cfg['vocab'], D), std=0.02, dtype=jnp.float32),
        'lm_head_T': lm_head.T.astype(jnp.bfloat16),   # pre-transposed (D, vocab)
        'enc_rel_bias': nrm((cfg['rel_buckets'], H), dtype=jnp.float32),
        'dec_rel_bias': nrm((cfg['rel_buckets'], H), dtype=jnp.float32),
        'enc_layers': [enc_layer() for _ in range(cfg['n_layers'])],
        'dec_layers': [dec_layer() for _ in range(cfg['n_layers'])],
        'enc_final_ln': jnp.ones((D,), jnp.float32),
        'dec_final_ln': jnp.ones((D,), jnp.float32),
    }


# ----------------------------- main -----------------------------

if __name__ == "__main__":
    cfg = dict(vocab=64, d_model=32, n_heads=4, d_kv=8, d_ff=64,
               n_layers=2, rel_buckets=8, rel_max_dist=16)

    key = jax.random.PRNGKey(0)
    pkey, k1, k2 = jax.random.split(key, 3)
    params = init_params(pkey, cfg)

    B, Se, Sd = 2, 8, 8
    enc_input_ids = jax.random.randint(k1, (B, Se), 0, cfg['vocab'])
    dec_input_ids = jax.random.randint(k2, (B, Sd), 0, cfg['vocab'])

    enc_attention_mask = jnp.ones((B, 1, Se, Se), jnp.float32)
    causal = jnp.tril(jnp.ones((Sd, Sd), jnp.float32))[None, None]
    dec_attention_mask = jnp.broadcast_to(causal, (B, 1, Sd, Sd))
    cross_attention_mask = jnp.ones((B, 1, Sd, Se), jnp.float32)

    outputs = encdec_forward(
        params, cfg,
        enc_input_ids=enc_input_ids, enc_position_ids=None,
        enc_attention_mask=enc_attention_mask,
        dec_input_ids=dec_input_ids, dec_position_ids=None,
        dec_attention_mask=dec_attention_mask,
        cross_attention_mask=cross_attention_mask,
    )

    jax.block_until_ready(outputs['lm_logits'])
    jax.block_until_ready(outputs['last_hidden_state'])
    jax.block_until_ready(outputs['encoder_last_hidden_state'])

    assert outputs['lm_logits'].shape == (B, Sd, cfg['vocab'])
    assert outputs['last_hidden_state'].shape == (B, Sd, cfg['d_model'])
    assert outputs['encoder_last_hidden_state'].shape == (B, Se, cfg['d_model'])
    assert bool(jnp.all(jnp.isfinite(outputs['lm_logits'])))
    print("KERNEL_OK")
</pallas_src>

<mosaic_0001>
module attributes {stable_mosaic.version = 11 : i64} {
  func.func @_self_attn_block_kernel(%arg0: i32, %arg1: memref<1x8x32xf32, #tpu.memory_space<vmem>>, %arg2: memref<1x32xf32, #tpu.memory_space<vmem>>, %arg3: memref<32x96xbf16, #tpu.memory_space<vmem>>, %arg4: memref<32x32xbf16, #tpu.memory_space<vmem>>, %arg5: memref<1x8x8xf32, #tpu.memory_space<vmem>>, %arg6: memref<4x8x8xf32, #tpu.memory_space<vmem>>, %arg7: memref<1x8x32xf32, #tpu.memory_space<vmem>>) attributes {dimension_semantics = [#tpu.dimension_semantics<parallel>], iteration_bounds = array<i64: 2>, scalar_prefetch = 0 : i64, scratch_operands = 0 : i64, tpu.core_type = #tpu.core_type<tc>, window_params = [{transform_indices = @transform_0, window_bounds = array<i64: 1, 8, 32>}, {pipeline_mode = #tpu.pipeline_mode<synchronous>, transform_indices = @transform_1, window_bounds = array<i64: 1, 32>}, {pipeline_mode = #tpu.pipeline_mode<synchronous>, transform_indices = @transform_2, window_bounds = array<i64: 32, 96>}, {pipeline_mode = #tpu.pipeline_mode<synchronous>, transform_indices = @transform_3, window_bounds = array<i64: 32, 32>}, {transform_indices = @transform_4, window_bounds = array<i64: 1, 8, 8>}, {pipeline_mode = #tpu.pipeline_mode<synchronous>, transform_indices = @transform_5, window_bounds = array<i64: 4, 8, 8>}, {transform_indices = @transform_6, window_bounds = array<i64: 1, 8, 32>}]} {
    %c0 = arith.constant 0 : index
    %c0_0 = arith.constant 0 : index
    %c0_1 = arith.constant 0 : index
    %0 = vector.load %arg1[%c0, %c0_0, %c0_1] : memref<1x8x32xf32, #tpu.memory_space<vmem>>, vector<1x8x32xf32>
    %1 = vector.shape_cast %0 : vector<1x8x32xf32> to vector<8x32xf32>
    %2 = arith.mulf %1, %1 : vector<8x32xf32>
    %cst = arith.constant dense<0.000000e+00> : vector<8xf32>
    %3 = vector.multi_reduction <add>, %2, %cst [1] : vector<8x32xf32> to vector<8xf32>
    %4 = vector.shape_cast %3 : vector<8xf32> to vector<8x1xf32>
    %cst_2 = arith.constant 3.200000e+01 : f32
    %5 = vector.broadcast %cst_2 : f32 to vector<8x1xf32>
    %6 = arith.divf %4, %5 : vector<8x1xf32>
    %cst_3 = arith.constant 9.99999997E-7 : f32
    %7 = vector.broadcast %cst_3 : f32 to vector<8x1xf32>
    %8 = arith.addf %6, %7 : vector<8x1xf32>
    %9 = math.rsqrt %8 : vector<8x1xf32>
    %10 = vector.broadcast %9 : vector<8x1xf32> to vector<8x32xf32>
    %11 = arith.mulf %1, %10 : vector<8x32xf32>
    %c0_4 = arith.constant 0 : index
    %c0_5 = arith.constant 0 : index
    %12 = vector.load %arg2[%c0_4, %c0_5] : memref<1x32xf32, #tpu.memory_space<vmem>>, vector<1x32xf32>
    %13 = vector.broadcast %12 : vector<1x32xf32> to vector<8x32xf32>
    %14 = arith.mulf %11, %13 : vector<8x32xf32>
    %15 = arith.truncf %14 : vector<8x32xf32> to vector<8x32xbf16>
    %c0_6 = arith.constant 0 : index
    %c0_7 = arith.constant 0 : index
    %16 = vector.load %arg3[%c0_6, %c0_7] : memref<32x96xbf16, #tpu.memory_space<vmem>>, vector<32x96xbf16>
    %cst_8 = arith.constant dense<0.000000e+00> : vector<8x96xf32>
    %17 = tpu.matmul %15, %16, %cst_8 {dimension_numbers = #tpu.dot_dimension_numbers<[1], [0], [0], [1], [0, 0, 1, 1], [], []>} : vector<8x32xbf16>, vector<32x96xbf16>, vector<8x96xf32> -> vector<8x96xf32>
    %18 = vector.extract_strided_slice %17 {offsets = [0, 0], sizes = [8, 32], strides = [1, 1]} : vector<8x96xf32> to vector<8x32xf32>
    %19 = vector.extract_strided_slice %17 {offsets = [0, 32], sizes = [8, 32], strides = [1, 1]} : vector<8x96xf32> to vector<8x32xf32>
    %20 = vector.extract_strided_slice %17 {offsets = [0, 64], sizes = [8, 32], strides = [1, 1]} : vector<8x96xf32> to vector<8x32xf32>
    %c0_9 = arith.constant 0 : index
    %c0_10 = arith.constant 0 : index
    %c0_11 = arith.constant 0 : index
    %21 = vector.load %arg5[%c0_9, %c0_10, %c0_11] : memref<1x8x8xf32, #tpu.memory_space<vmem>>, vector<1x8x8xf32>
    %22 = vector.shape_cast %21 : vector<1x8x8xf32> to vector<8x8xf32>
    %23 = vector.extract_strided_slice %18 {offsets = [0, 0], sizes = [8, 8], strides = [1, 1]} : vector<8x32xf32> to vector<8x8xf32>
    %24 = arith.truncf %23 : vector<8x8xf32> to vector<8x8xbf16>
    %25 = vector.extract_strided_slice %19 {offsets = [0, 0], sizes = [8, 8], strides = [1, 1]} : vector<8x32xf32> to vector<8x8xf32>
    %26 = arith.truncf %25 : vector<8x8xf32> to vector<8x8xbf16>
    %27 = vector.extract_strided_slice %20 {offsets = [0, 0], sizes = [8, 8], strides = [1, 1]} : vector<8x32xf32> to vector<8x8xf32>
    %28 = arith.truncf %27 : vector<8x8xf32> to vector<8x8xbf16>
    %cst_12 = arith.constant dense<0.000000e+00> : vector<8x8xf32>
    %29 = tpu.matmul %24, %26, %cst_12 {dimension_numbers = #tpu.dot_dimension_numbers<[1], [1], [0], [0], [0, 0, 1, 0], [], []>} : vector<8x8xbf16>, vector<8x8xbf16>, vector<8x8xf32> -> vector<8x8xf32>
    %30 = arith.addf %29, %22 : vector<8x8xf32>
    %c0_13 = arith.constant 0 : index
    %c0_14 = arith.constant 0 : index
    %c0_15 = arith.constant 0 : index
    %31 = vector.load %arg6[%c0_13, %c0_14, %c0_15] : memref<4x8x8xf32, #tpu.memory_space<vmem>>, vector<1x8x8xf32>
    %32 = vector.shape_cast %31 : vector<1x8x8xf32> to vector<8x8xf32>
    %33 = arith.addf %30, %32 : vector<8x8xf32>
    %cst_16 = arith.constant dense<0xFF800000> : vector<8xf32>
    %34 = vector.multi_reduction <maximumf>, %33, %cst_16 [1] : vector<8x8xf32> to vector<8xf32>
    %35 = vector.shape_cast %34 : vector<8xf32> to vector<8x1xf32>
    %36 = vector.broadcast %35 : vector<8x1xf32> to vector<8x8xf32>
    %37 = arith.subf %33, %36 : vector<8x8xf32>
    %38 = math.exp %37 : vector<8x8xf32>
    %cst_17 = arith.constant dense<0.000000e+00> : vector<8xf32>
    %39 = vector.multi_reduction <add>, %38, %cst_17 [1] : vector<8x8xf32> to vector<8xf32>
    %40 = vector.shape_cast %39 : vector<8xf32> to vector<8x1xf32>
    %41 = vector.broadcast %40 : vector<8x1xf32> to vector<8x8xf32>
    %42 = arith.divf %38, %41 : vector<8x8xf32>
    %43 = arith.truncf %42 : vector<8x8xf32> to vector<8x8xbf16>
    %cst_18 = arith.constant dense<0.000000e+00> : vector<8x8xf32>
    %44 = tpu.matmul %43, %28, %cst_18 {dimension_numbers = #tpu.dot_dimension_numbers<[1], [0], [0], [1], [0, 0, 1, 1], [], []>} : vector<8x8xbf16>, vector<8x8xbf16>, vector<8x8xf32> -> vector<8x8xf32>
    %45 = arith.truncf %44 : vector<8x8xf32> to vector<8x8xbf16>
    %c0_19 = arith.constant 0 : index
    %c0_20 = arith.constant 0 : index
    %46 = vector.load %arg4[%c0_19, %c0_20] : memref<32x32xbf16, #tpu.memory_space<vmem>>, vector<8x32xbf16>
    %cst_21 = arith.constant dense<0.000000e+00> : vector<8x32xf32>
    %47 = tpu.matmul %45, %46, %cst_21 {dimension_numbers = #tpu.dot_dimension_numbers<[1], [0], [0], [1], [0, 0, 1, 1], [], []>} : vector<8x8xbf16>, vector<8x32xbf16>, vector<8x32xf32> -> vector<8x32xf32>
    %48 = vector.extract_strided_slice %18 {offsets = [0, 8], sizes = [8, 8], strides = [1, 1]} : vector<8x32xf32> to vector<8x8xf32>
    %49 = arith.truncf %48 : vector<8x8xf32> to vector<8x8xbf16>
    %50 = vector.extract_strided_slice %19 {offsets = [0, 8], sizes = [8, 8], strides = [1, 1]} : vector<8x32xf32> to vector<8x8xf32>
    %51 = arith.truncf %50 : vector<8x8xf32> to vector<8x8xbf16>
    %52 = vector.extract_strided_slice %20 {offsets = [0, 8], sizes = [8, 8], strides = [1, 1]} : vector<8x32xf32> to vector<8x8xf32>
    %53 = arith.truncf %52 : vector<8x8xf32> to vector<8x8xbf16>
    %cst_22 = arith.constant dense<0.000000e+00> : vector<8x8xf32>
    %54 = tpu.matmul %49, %51, %cst_22 {dimension_numbers = #tpu.dot_dimension_numbers<[1], [1], [0], [0], [0, 0, 1, 0], [], []>} : vector<8x8xbf16>, vector<8x8xbf16>, vector<8x8xf32> -> vector<8x8xf32>
    %55 = arith.addf %54, %22 : vector<8x8xf32>
    %c1 = arith.constant 1 : index
    %c0_23 = arith.constant 0 : index
    %c0_24 = arith.constant 0 : index
    %56 = vector.load %arg6[%c1, %c0_23, %c0_24] : memref<4x8x8xf32, #tpu.memory_space<vmem>>, vector<1x8x8xf32>
    %57 = vector.shape_cast %56 : vector<1x8x8xf32> to vector<8x8xf32>
    %58 = arith.addf %55, %57 : vector<8x8xf32>
    %cst_25 = arith.constant dense<0xFF800000> : vector<8xf32>
    %59 = vector.multi_reduction <maximumf>, %58, %cst_25 [1] : vector<8x8xf32> to vector<8xf32>
    %60 = vector.shape_cast %59 : vector<8xf32> to vector<8x1xf32>
    %61 = vector.broadcast %60 : vector<8x1xf32> to vector<8x8xf32>
    %62 = arith.subf %58, %61 : vector<8x8xf32>
    %63 = math.exp %62 : vector<8x8xf32>
    %cst_26 = arith.constant dense<0.000000e+00> : vector<8xf32>
    %64 = vector.multi_reduction <add>, %63, %cst_26 [1] : vector<8x8xf32> to vector<8xf32>
    %65 = vector.shape_cast %64 : vector<8xf32> to vector<8x1xf32>
    %66 = vector.broadcast %65 : vector<8x1xf32> to vector<8x8xf32>
    %67 = arith.divf %63, %66 : vector<8x8xf32>
    %68 = arith.truncf %67 : vector<8x8xf32> to vector<8x8xbf16>
    %cst_27 = arith.constant dense<0.000000e+00> : vector<8x8xf32>
    %69 = tpu.matmul %68, %53, %cst_27 {dimension_numbers = #tpu.dot_dimension_numbers<[1], [0], [0], [1], [0, 0, 1, 1], [], []>} : vector<8x8xbf16>, vector<8x8xbf16>, vector<8x8xf32> -> vector<8x8xf32>
    %70 = arith.truncf %69 : vector<8x8xf32> to vector<8x8xbf16>
    %c8 = arith.constant 8 : index
    %c0_28 = arith.constant 0 : index
    %71 = vector.load %arg4[%c8, %c0_28] : memref<32x32xbf16, #tpu.memory_space<vmem>>, vector<8x32xbf16>
    %cst_29 = arith.constant dense<0.000000e+00> : vector<8x32xf32>
    %72 = tpu.matmul %70, %71, %cst_29 {dimension_numbers = #tpu.dot_dimension_numbers<[1], [0], [0], [1], [0, 0, 1, 1], [], []>} : vector<8x8xbf16>, vector<8x32xbf16>, vector<8x32xf32> -> vector<8x32xf32>
    %73 = arith.addf %47, %72 : vector<8x32xf32>
    %74 = vector.extract_strided_slice %18 {offsets = [0, 16], sizes = [8, 8], strides = [1, 1]} : vector<8x32xf32> to vector<8x8xf32>
    %75 = arith.truncf %74 : vector<8x8xf32> to vector<8x8xbf16>
    %76 = vector.extract_strided_slice %19 {offsets = [0, 16], sizes = [8, 8], strides = [1, 1]} : vector<8x32xf32> to vector<8x8xf32>
    %77 = arith.truncf %76 : vector<8x8xf32> to vector<8x8xbf16>
    %78 = vector.extract_strided_slice %20 {offsets = [0, 16], sizes = [8, 8], strides = [1, 1]} : vector<8x32xf32> to vector<8x8xf32>
    %79 = arith.truncf %78 : vector<8x8xf32> to vector<8x8xbf16>
    %cst_30 = arith.constant dense<0.000000e+00> : vector<8x8xf32>
    %80 = tpu.matmul %75, %77, %cst_30 {dimension_numbers = #tpu.dot_dimension_numbers<[1], [1], [0], [0], [0, 0, 1, 0], [], []>} : vector<8x8xbf16>, vector<8x8xbf16>, vector<8x8xf32> -> vector<8x8xf32>
    %81 = arith.addf %80, %22 : vector<8x8xf32>
    %c2 = arith.constant 2 : index
    %c0_31 = arith.constant 0 : index
    %c0_32 = arith.constant 0 : index
    %82 = vector.load %arg6[%c2, %c0_31, %c0_32] : memref<4x8x8xf32, #tpu.memory_space<vmem>>, vector<1x8x8xf32>
    %83 = vector.shape_cast %82 : vector<1x8x8xf32> to vector<8x8xf32>
    %84 = arith.addf %81, %83 : vector<8x8xf32>
    %cst_33 = arith.constant dense<0xFF800000> : vector<8xf32>
    %85 = vector.multi_reduction <maximumf>, %84, %cst_33 [1] : vector<8x8xf32> to vector<8xf32>
    %86 = vector.shape_cast %85 : vector<8xf32> to vector<8x1xf32>
    %87 = vector.broadcast %86 : vector<8x1xf32> to vector<8x8xf32>
    %88 = arith.subf %84, %87 : vector<8x8xf32>
    %89 = math.exp %88 : vector<8x8xf32>
    %cst_34 = arith.constant dense<0.000000e+00> : vector<8xf32>
    %90 = vector.multi_reduction <add>, %89, %cst_34 [1] : vector<8x8xf32> to vector<8xf32>
    %91 = vector.shape_cast %90 : vector<8xf32> to vector<8x1xf32>
    %92 = vector.broadcast %91 : vector<8x1xf32> to vector<8x8xf32>
    %93 = arith.divf %89, %92 : vector<8x8xf32>
    %94 = arith.truncf %93 : vector<8x8xf32> to vector<8x8xbf16>
    %cst_35 = arith.constant dense<0.000000e+00> : vector<8x8xf32>
    %95 = tpu.matmul %94, %79, %cst_35 {dimension_numbers = #tpu.dot_dimension_numbers<[1], [0], [0], [1], [0, 0, 1, 1], [], []>} : vector<8x8xbf16>, vector<8x8xbf16>, vector<8x8xf32> -> vector<8x8xf32>
    %96 = arith.truncf %95 : vector<8x8xf32> to vector<8x8xbf16>
    %c16 = arith.constant 16 : index
    %c0_36 = arith.constant 0 : index
    %97 = vector.load %arg4[%c16, %c0_36] : memref<32x32xbf16, #tpu.memory_space<vmem>>, vector<8x32xbf16>
    %cst_37 = arith.constant dense<0.000000e+00> : vector<8x32xf32>
    %98 = tpu.matmul %96, %97, %cst_37 {dimension_numbers = #tpu.dot_dimension_numbers<[1], [0], [0], [1], [0, 0, 1, 1], [], []>} : vector<8x8xbf16>, vector<8x32xbf16>, vector<8x32xf32> -> vector<8x32xf32>
    %99 = arith.addf %73, %98 : vector<8x32xf32>
    %100 = vector.extract_strided_slice %18 {offsets = [0, 24], sizes = [8, 8], strides = [1, 1]} : vector<8x32xf32> to vector<8x8xf32>
    %101 = arith.truncf %100 : vector<8x8xf32> to vector<8x8xbf16>
    %102 = vector.extract_strided_slice %19 {offsets = [0, 24], sizes = [8, 8], strides = [1, 1]} : vector<8x32xf32> to vector<8x8xf32>
    %103 = arith.truncf %102 : vector<8x8xf32> to vector<8x8xbf16>
    %104 = vector.extract_strided_slice %20 {offsets = [0, 24], sizes = [8, 8], strides = [1, 1]} : vector<8x32xf32> to vector<8x8xf32>
    %105 = arith.truncf %104 : vector<8x8xf32> to vector<8x8xbf16>
    %cst_38 = arith.constant dense<0.000000e+00> : vector<8x8xf32>
    %106 = tpu.matmul %101, %103, %cst_38 {dimension_numbers = #tpu.dot_dimension_numbers<[1], [1], [0], [0], [0, 0, 1, 0], [], []>} : vector<8x8xbf16>, vector<8x8xbf16>, vector<8x8xf32> -> vector<8x8xf32>
    %107 = arith.addf %106, %22 : vector<8x8xf32>
    %c3 = arith.constant 3 : index
    %c0_39 = arith.constant 0 : index
    %c0_40 = arith.constant 0 : index
    %108 = vector.load %arg6[%c3, %c0_39, %c0_40] : memref<4x8x8xf32, #tpu.memory_space<vmem>>, vector<1x8x8xf32>
    %109 = vector.shape_cast %108 : vector<1x8x8xf32> to vector<8x8xf32>
    %110 = arith.addf %107, %109 : vector<8x8xf32>
    %cst_41 = arith.constant dense<0xFF800000> : vector<8xf32>
    %111 = vector.multi_reduction <maximumf>, %110, %cst_41 [1] : vector<8x8xf32> to vector<8xf32>
    %112 = vector.shape_cast %111 : vector<8xf32> to vector<8x1xf32>
    %113 = vector.broadcast %112 : vector<8x1xf32> to vector<8x8xf32>
    %114 = arith.subf %110, %113 : vector<8x8xf32>
    %115 = math.exp %114 : vector<8x8xf32>
    %cst_42 = arith.constant dense<0.000000e+00> : vector<8xf32>
    %116 = vector.multi_reduction <add>, %115, %cst_42 [1] : vector<8x8xf32> to vector<8xf32>
    %117 = vector.shape_cast %116 : vector<8xf32> to vector<8x1xf32>
    %118 = vector.broadcast %117 : vector<8x1xf32> to vector<8x8xf32>
    %119 = arith.divf %115, %118 : vector<8x8xf32>
    %120 = arith.truncf %119 : vector<8x8xf32> to vector<8x8xbf16>
    %cst_43 = arith.constant dense<0.000000e+00> : vector<8x8xf32>
    %121 = tpu.matmul %120, %105, %cst_43 {dimension_numbers = #tpu.dot_dimension_numbers<[1], [0], [0], [1], [0, 0, 1, 1], [], []>} : vector<8x8xbf16>, vector<8x8xbf16>, vector<8x8xf32> -> vector<8x8xf32>
    %122 = arith.truncf %121 : vector<8x8xf32> to vector<8x8xbf16>
    %c24 = arith.constant 24 : index
    %c0_44 = arith.constant 0 : index
    %123 = vector.load %arg4[%c24, %c0_44] : memref<32x32xbf16, #tpu.memory_space<vmem>>, vector<8x32xbf16>
    %cst_45 = arith.constant dense<0.000000e+00> : vector<8x32xf32>
    %124 = tpu.matmul %122, %123, %cst_45 {dimension_numbers = #tpu.dot_dimension_numbers<[1], [0], [0], [1], [0, 0, 1, 1], [], []>} : vector<8x8xbf16>, vector<8x32xbf16>, vector<8x32xf32> -> vector<8x32xf32>
    %125 = arith.addf %99, %124 : vector<8x32xf32>
    %126 = arith.addf %1, %125 : vector<8x32xf32>
    %c0_46 = arith.constant 0 : index
    %c0_47 = arith.constant 0 : index
    %c0_48 = arith.constant 0 : index
    %127 = vector.load %arg7[%c0_46, %c0_47, %c0_48] : memref<1x8x32xf32, #tpu.memory_space<vmem>>, vector<1x8x32xf32>
    %128 = vector.shape_cast %127 : vector<1x8x32xf32> to vector<8x32xf32>
    %129 = vector.shape_cast %126 : vector<8x32xf32> to vector<1x8x32xf32>
    tpu.vector_store %arg7[%c0_46, %c0_47, %c0_48], %129 {strides = array<i32>} : memref<1x8x32xf32, #tpu.memory_space<vmem>>, vector<1x8x32xf32>,
    return
  }
  func.func @transform_0(%arg0: i32) -> (i32, i32, i32) {
    %c0_i32 = arith.constant 0 : i32
    %c0_i32_0 = arith.constant 0 : i32
    %c0_i32_1 = arith.constant 0 : i32
    return %arg0, %c0_i32, %c0_i32_0 : i32, i32, i32
  }
  func.func @transform_1(%arg0: i32) -> (i32, i32) {
    %c0_i32 = arith.constant 0 : i32
    %c0_i32_0 = arith.constant 0 : i32
    %c0_i32_1 = arith.constant 0 : i32
    return %c0_i32, %c0_i32_0 : i32, i32
  }
  func.func @transform_2(%arg0: i32) -> (i32, i32) {
    %c0_i32 = arith.constant 0 : i32
    %c0_i32_0 = arith.constant 0 : i32
    %c0_i32_1 = arith.constant 0 : i32
    return %c0_i32, %c0_i32_0 : i32, i32
  }
  func.func @transform_3(%arg0: i32) -> (i32, i32) {
    %c0_i32 = arith.constant 0 : i32
    %c0_i32_0 = arith.constant 0 : i32
    %c0_i32_1 = arith.constant 0 : i32
    return %c0_i32, %c0_i32_0 : i32, i32
  }
  func.func @transform_4(%arg0: i32) -> (i32, i32, i32) {
    %c0_i32 = arith.constant 0 : i32
    %c0_i32_0 = arith.constant 0 : i32
    %c0_i32_1 = arith.constant 0 : i32
    return %arg0, %c0_i32, %c0_i32_0 : i32, i32, i32
  }
  func.func @transform_5(%arg0: i32) -> (i32, i32, i32) {
    %c0_i32 = arith.constant 0 : i32
    %c0_i32_0 = arith.constant 0 : i32
    %c0_i32_1 = arith.constant 0 : i32
    %c0_i32_2 = arith.constant 0 : i32
    return %c0_i32, %c0_i32_0, %c0_i32_1 : i32, i32, i32
  }
  func.func @transform_6(%arg0: i32) -> (i32, i32, i32) {
    %c0_i32 = arith.constant 0 : i32
    %c0_i32_0 = arith.constant 0 : i32
    %c0_i32_1 = arith.constant 0 : i32
    return %arg0, %c0_i32, %c0_i32_0 : i32, i32, i32
  }
}

</mosaic_0001>

<bundles_post_ra>
// kernel: tpu_custom_call.1
= control target key start
LH: loop header
LB: loop body
LE: loop exit
PB: predicated region body
PF: predicated region fallthrough
CT: control target
= control target key end

     0   :  { %s1733_s0 = inlined_call_operand.hbm [shape: f32[2,8,32], index: 0, kind: input, shape index: {}]   ;;  %s1734_s1 = inlined_call_operand.hbm [shape: f32[1,32], index: 1, kind: input, shape index: {}]   ;;  %s1735_s2 = inlined_call_operand.hbm [shape: bf16[32,96], index: 2, kind: input, shape index: {}]   ;;  %s1736_s3 = inlined_call_operand.hbm [shape: bf16[32,32], index: 3, kind: input, shape index: {}]   ;;  %s1737_s4 = inlined_call_operand.hbm [shape: f32[2,8,8], index: 4, kind: input, shape index: {}]   ;;  %s1738_s5 = inlined_call_operand.hbm [shape: f32[4,8,8], index: 5, kind: input, shape index: {}]   ;;  %s1739_s6 = inlined_call_operand.hbm [shape: f32[2,8,32], index: 6, kind: output, shape index: {}]  }
   0x1   :  { %1744 = sst [smem:[#allocation21_spill]] %s1733_s0 }
   0x2   :  { %1745 = sst [smem:[#allocation22_spill]] %s1734_s1 }
   0x3   :  { %1746 = sst [smem:[#allocation23_spill]] %s1735_s2 }
   0x4   :  { %1747 = sst [smem:[#allocation24_spill]] %s1736_s3 }
   0x5   :  { %11 = vsyncpa [#allocation3], 0 }
   0x6   :  { %13 = vsyncpa [#allocation3 + $0x1], 0 }
   0x7   :  { %14 = vsyncpa [#allocation6], 0 }
   0x8   :  { %15 = vsyncpa [#allocation9], 0 }
   0x9   :  { %16 = vsyncpa [#allocation4], 0 }
   0xa   :  { %18 = vsyncpa [#allocation4 + $0x1], 0  ;;  %s1450_s21 = smov 0   ;;  %s1452_s22 = smov 0  }
   0xb   :  { %s1454_s23 = smov 0   ;;  %s1456_s24 = smov 0  }
   0xc LB: > { %1748 = sst [smem:[#allocation19_spill]] %s1389_s23  ;;  %s1474_s28 = sadd.s32 4294967295, %s1393_s24   ;;  %s1393_s24 = sphi %s1456_s24, %s1774_s24   ;;  %s1389_s23 = sphi %s1454_s23, %s1771_s23   ;;  %s1385_s22 = sphi %s1452_s22, %s1773_s22   ;;  %s1381_s21 = sphi %s1450_s21, %s1772_s21  }
   0xd   : > { %s1749_s1 = sld [smem:[#allocation22_spill]]  ;;  %p957_p0 = scmp.ge.s32.totalorder %s1393_s24, 1 }
   0xe   : > { %p1743_p1 = scmp.eq.s32.totalorder %s1474_s28, 0  ;;  %p191_p2 = scmp.lt.s32.totalorder %s1393_s24, 3 }
   0xf   : > { %s1395_s30 = smov [#allocation5]   ;;  %s1751_s2 = sld [smem:[#allocation23_spill]] }
  0x10   : > { %p1479_p3 = pnand %p957_p0, %p191_p2  ;;  %s205_s7 = sshll.u32 %s1395_s30, 4  ;;  %s206_s7 = int_to_ptr.vmem [resolvable:$true] %s205_s7 }
  0x11   : > { %s1396_s12 = smov [#allocation7]   ;;  %s1740_s14 = smov 64  }
  0x12   : > { %p1024_p5 = pneg %p1479_p3  ;;  %s216_s13 = sshll.u32 %s1396_s12, 4  ;;  %s217_s13 = int_to_ptr.vmem [resolvable:$true] %s216_s13 }
  0x13   : > { %s203_s27 = sshll.u32 %s1749_s1, 4  ;;  %s1741_s15 = smov 4   ;;  %s204_s27 = int_to_ptr.hbm [resolvable:$true] %s203_s27 }
  0x14   : > { %p1491_p6 = pnand %p1024_p5, %p1743_p1  ;;  %s956_s16 = sadd.s32 4294967294, %s1393_s24  }
  0x15   : > { %s214_s10 = sshll.u32 %s1751_s2, 4  ;;  %s1504_s17 = sadd.s32 1, %s1393_s24   ;;  %s215_s10 = int_to_ptr.hbm [resolvable:$true] %s214_s10 }
  0x16   : > { %1027 = dma.hbm_to_vmem [thread:$0]  (!%p1491_p6), %s204_s27, 16, %s206_s7, [#allocation6]  }
  0x17   : > { %1030 = dma.hbm_to_vmem [thread:$0]  (!%p1491_p6), %s215_s10, 256, %s217_s13, [#allocation6], %s1740_s14, %s1740_s14, %s1741_s15  }
  0x18   : > { %s28_s18 = ssub.s32 %s1393_s24, %s1504_s17  ;;  %s31_s19 = sadd.s32 1, %s1389_s23 }
  0x19   : > { %p29_p7 = scmp.eq.s32.totalorder %s28_s18, 0  ;;  %p38_p8 = scmp.ne.s32.totalorder %s1389_s23, %s1385_s22 }
  0x1a   : > { %p39_p9 = scmp.eq.s32.totalorder %s1393_s24, 0  ;;  %p44_p10 = scmp.ne.s32.totalorder %s1385_s22, %s1381_s21 }
  0x1b   : > { %s1515_s20 = scalar_select %p29_p7, %s1389_s23, %s31_s19  }
  0x1c   : > { %p1517_p11 = por %p39_p9, %p38_p8  ;;  %p1523_p12 = por %p1743_p1, %p44_p10 }
  0x1d   : > { %1753 = sst [smem:[#allocation20_spill]] %s1515_s20  ;;  %p178_p13 = scmp.eq.s32.totalorder %s1474_s28, 1 }
  0x1e   : > { %p184_p0 = scmp.eq.s32.totalorder %s956_s16, 1  ;;  %p1052_p2 = scmp.lt.s32.totalorder %s1393_s24, 2 }
  0x1f   : > { %s258_s27 = sand.u32 1, %s1393_s24   ;;  %p1530_p5 = por %p178_p13, %p38_p8 }
  0x20   : > { %p1534_p7 = por %p184_p0, %p44_p10  ;;  %s260_s8 = sand.u32 1, %s1389_s23  }
  0x21   : > { %s1539_s9 = sshll.u32 %s260_s8, 3  ;;  %s964_s10 = sshll.u32 %s1393_s24, 3 }
  0x22   : > { %s1758_s0 = sld [smem:[#allocation21_spill]]  ;;  %s262_s19 = scalar_lea.vmem [#allocation2], %s1539_s9 }
  0x23   : > { %s270_s14 = sshll.u32 %s262_s19, 4  ;;  %p1550_p8 = pnand %p1052_p2, %p1517_p11  ;;  %s271_s14 = int_to_ptr.vmem [resolvable:$true] %s270_s14 }
  0x24   : > { %s1557_s2 = scalar_lea.hbm %s1737_s4, %s964_s10  ;;  %s1760_s3 = sld [smem:[#allocation24_spill]] }
  0x25   : > { %s1562_s19 = scalar_lea.sflag [#allocation3], %s258_s27  ;;  %p1195_p10 = pneg %p1550_p8 }
  0x28   : > { %s266_s18 = scalar_lea.hbm %s1758_s0, %s964_s10  ;;  %s1198_s8 = scalar_lea.hbm %s1758_s0, 16 }
  0x29   : > { %s268_s16 = sshll.u32 %s266_s18, 4  ;;  %s269_s16 = int_to_ptr.hbm [resolvable:$true] %s268_s16 }
  0x2a   : > { %s228_s18 = sshll.u32 %s1760_s3, 4  ;;  %s1191_s25 = sshra.s32 %s269_s16, 4  ;;  %s229_s18 = int_to_ptr.hbm [resolvable:$true] %s228_s18  ;;  %s1192_s25 = int_to_ptr.hbm [resolvable:$true] %s1191_s25 }
  0x2b   : > { %s1193_s20 = scalar_lea.hbm %s1192_s25, 8  ;;  %p1199_p0 = scmp.lt.s32.totalorder %s1192_s25, %s1758_s0 }
  0x2c   : > { %p1194_p9 = scmp.ne.s32.totalorder %s1192_s25, %s1193_s20  ;;  %p1200_p2 = scmp.lt.s32.totalorder %s1198_s8, %s1193_s20 }
  0x2e   : > { %p1196_p11 = pnand %p1195_p10, %p1194_p9  ;;  %p1201_p4 = por %p1200_p2, %p1199_p0 }
  0x30   : > { %p1197_p13 = pneg %p1196_p11 }
  0x32   : > { %p1202_p1 = pnand %p1201_p4, %p1197_p13 }
  0x34   : > { %1205 = shalt.err (!%p1202_p1)
}
  0x35   : > { %1040 = dma.hbm_to_vmem [thread:$0]  (!%p1550_p8), %s269_s16, 128, %s271_s14, %s1562_s19  }
  0x36   : > { %s242_s1 = sshll.u32 %s1738_s5, 4  ;;  %s1399_s10 = smov [#allocation8]   ;;  %s243_s1 = int_to_ptr.hbm [resolvable:$true] %s242_s1 }
  0x37   : > { %s230_s3 = sshll.u32 %s1399_s10, 4  ;;  %s1761_s23 = smov 4   ;;  %s231_s3 = int_to_ptr.vmem [resolvable:$true] %s230_s3 }
  0x38   : > { %s1762_s20 = smov 64   ;;  %s1400_s25 = smov [#allocation11]  }
  0x39   : > { %1033 = dma.hbm_to_vmem [thread:$0]  (!%p1491_p6), %s229_s18, 256, %s231_s3, [#allocation9], %s1762_s20, %s1762_s20, %s1761_s23  }
  0x3a   : > { %s244_s8 = sshll.u32 %s1400_s25, 4  ;;  %s1401_s12 = smov 128   ;;  %s245_s8 = int_to_ptr.vmem [resolvable:$true] %s244_s8 }
  0x3b   : > { %s1402_s0 = smov 8   ;;  %s287_s14 = sshll.u32 %s1557_s2, 4  ;;  %s288_s14 = int_to_ptr.hbm [resolvable:$true] %s287_s14 }
  0x3c   : > { %1036 = dma.hbm_to_vmem [thread:$0]  (!%p1491_p6), %s243_s1, 512, %s245_s8, [#allocation6], %s1401_s12, %s1401_s12, %s1402_s0  }
  0x3d   : > { %s281_s16 = scalar_lea.vmem [#allocation10], %s1539_s9  ;;  %s1281_s13 = sshra.s32 %s288_s14, 4  ;;  %s1282_s13 = int_to_ptr.hbm [resolvable:$true] %s1281_s13 }
  0x3e   : > { %s289_s27 = sshll.u32 %s281_s16, 4  ;;  %s1283_s10 = scalar_lea.hbm %s1282_s13, 8  ;;  %s290_s27 = int_to_ptr.vmem [resolvable:$true] %s289_s27 }
  0x3f   : > { %p1284_p1 = scmp.ne.s32.totalorder %s1282_s13, %s1283_s10  ;;  %s1288_s23 = scalar_lea.hbm %s1737_s4, 16 }
  0x40   : > { %p1289_p6 = scmp.lt.s32.totalorder %s1282_s13, %s1737_s4  ;;  %p1290_p11 = scmp.lt.s32.totalorder %s1288_s23, %s1283_s10 }
  0x41   : > { %p1286_p4 = pnand %p1284_p1, %p1195_p10 }
  0x42   : > { %p1291_p13 = por %p1290_p11, %p1289_p6 }
  0x43   : > { %p1287_p9 = pneg %p1286_p4 }
  0x45   : > { %p1292_p0 = pnand %p1291_p13, %p1287_p9 }
  0x47   : > { %1295 = shalt.err (!%p1292_p0)
}
  0x48   : > { %1043 = dma.hbm_to_vmem [thread:$0]  (!%p1550_p8), %s288_s14, 128, %s290_s27, %s1562_s19  }
  0x49   : > { %298 = sbr.rel (%p1479_p3) target bundleno = 1706 (0x6aa), region = 44  ;;  %s300_s0 = sand.u32 (!%p1479_p3), 1, %s1474_s28  }
  0x4a   : > { %s302_s2 = sand.u32 (!%p1479_p3), 1, %s1385_s22   ;;  %s301_s1 = scalar_lea.sflag (!%p1479_p3), [#allocation3], %s300_s0 }
  0x4b   : > { %s1608_s9 = sshll.u32 (!%p1479_p3), %s302_s2, 3 }
  0x4c   : > { %s304_s25 = scalar_lea.vmem (!%p1479_p3), [#allocation2], %s1608_s9 }
  0x4e   : > { %1356 = dma.done.wait (%p1523_p12), %s301_s1, 128  }
  0x4f   : > { %1358 = vsyncadd (%p1523_p12), %s301_s1, 4294967168  ;;  %p1763_p8 = scmp.eq.s32.totalorder %s1474_s28, 0 }
  0x51   : > { %1360 = dma.done.wait (%p1763_p8), [#allocation6], 272   ;;  %p1764_p3 = pmov %p1763_p8 }
  0x53   : > { %1362 = vsyncadd (%p1764_p3), [#allocation6], 4294967024  ;;  %p1765_p10 = pmov %p1764_p3 }
  0x54   : > { %p1766_p2 = pmov %p1764_p3 }
  0x55   : > { %1364 = dma.done.wait (%p1765_p10), [#allocation9], 256  }
  0x56   : > { %1366 = vsyncadd (%p1766_p2), [#allocation9], 4294967040  ;;  %s329_s29 = scalar_lea.vmem [#allocation10], %s1608_s9 }
  0x57   : > { %1368 = dma.done.wait (%p1523_p12), %s301_s1, 128  }
  0x58   : > { %1370 = vsyncadd (%p1523_p12), %s301_s1, 4294967168  ;;  %p1767_p1 = pmov %p1766_p2 }
  0x5a   : > { %1372 = dma.done.wait (%p1767_p1), [#allocation6], 512   ;;  %p1768_p4 = pmov %p1767_p1 }
  0x5b   : > { %v1632_v0 = vld [vmem:[%s304_s25] sm:$0xff]  ;;  %vm372_vm0 = vcmask 261120   ;;  %v1403_v3 = vmov 32.0   ;;  %v1000_v9 = vld [vmem:[#allocation7] sm:$0xff]  ;;  %v1110_v21 = vld [vmem:[#allocation5] ss:$0 sm:$0xff] }
  0x5c   : > { %1374 = vsyncadd (%p1768_p4), [#allocation6], 4294966784  ;;  %v371_v1 = vmul.f32 %v1632_v0, %v1632_v0  ;;  %1111 = vrcp.f32 %v1403_v3  ;;  %v1001_v7 = vld [vmem:[#allocation7 + $0x8] sm:$0xff]  ;;  %s1404_s15 = smov 64   ;;  %s1405_s26 = smov 96   ;;  %vm491_vm5 = vcmask 1043456  }
  0x5d   : > { %427 = vmatpush.bf16.msra.mxu0 %v1001_v7  ;;  %s1406_s19 = smov 88   ;;  %s1407_s8 = smov 112   ;;  %vm439_vm6 = vcmask 64512   ;;  %v509_v35 = vld [vmem:[#allocation8] sm:$0xf]  ;;  %v1658_v41 = vld [vmem:[%s329_s29] sm:$0xff] }
  0x5e   : > { %v373_v2 = vsel %vm372_vm0, %v371_v1, 0.0  ;;  %s1408_s12 = smov 80   ;;  %s1409_s14 = smov 72   ;;  %v607_v37 = vsel %vm491_vm5, %v509_v35, 0  ;;  %v459_v43 = vld [vmem:[#allocation11] sm:$0xff] }
  0x5f   : > { %374 = vadd.xlane.f32.xlu0 %v373_v2  ;;  %s1410_s16 = smov 104   ;;  %s1411_s27 = smov 120  }
  0x60   : > { %s1412_s13 = smov 56   ;;  %s1413_s10 = smov 48  }
  0x61   : > { %428 = vmatpush.bf16.msra.mxu0 %v1000_v9  ;;  %s1414_s3 = smov 40   ;;  %s997_s18 = sshll.u32 %s1474_s28, 3 }
  0x62   : > { %v1112_v4 = vpop.eup %1111  ;;  %s823_s11 = scalar_lea.hbm %s1739_s6, %s997_s18  ;;  %s368_s0 = scalar_lea.vmem [#allocation12], %s1608_s9 }
  0x63   : > { %v377_v5 = vmul.f32 32.0, %v1112_v4  ;;  %vm381_vm1 = vweird.f32 %v1112_v4  ;;  %s825_s1 = sshll.u32 %s368_s0, 4  ;;  %s827_s25 = sshll.u32 %s823_s11, 4  ;;  %s826_s1 = int_to_ptr.vmem [resolvable:$true] %s825_s1  ;;  %s828_s25 = int_to_ptr.hbm [resolvable:$true] %s827_s25 }
  0x64   : > { %s813_s29 = scalar_lea.sflag [#allocation4], %s302_s2 }
  0x65   : > { %v378_v6 = vsub.f32 1.0, %v377_v5 }
  0x67   : > { %v379_v8 = vmul.f32 %v1112_v4, %v378_v6 }
  0x69   : > { %v380_v10 = vadd.f32 %v1112_v4, %v379_v8  ;;  %v534_v8 = vld [vmem:[#allocation11 + $0x8] sm:$0xff] }
  0x6b   : > { %v382_v11 = vsel %vm381_vm1, %v1112_v4, %v380_v10 }
  0xd2   : > { %v375_v12 = vpop.xlane.xlu0 %374 }
  0xd3   : > { %v383_v13 = vmul.f32 %v382_v11, %v375_v12 }
  0xd5   : > { %v384_v14 = vadd.f32 1e-06, %v383_v13 }
  0xd7   : > { %1113 = vrsqrt.f32 %v384_v14  ;;  %vm391_vm3 = vweird.f32 %v384_v14 }
  0xdd   : > { %v1114_v15 = vpop.eup %1113 }
  0xde   : > { %v386_v16 = vmul.f32 %v1114_v15, %v384_v14  ;;  %vm392_vm2 = vweird.f32 %v1114_v15 }
  0xdf   : > { %vm393_vm4 = vmor %vm391_vm3, %vm392_vm2 }
  0xe0   : > { %v387_v17 = vmul.f32 %v1114_v15, %v386_v16  ;;  %v646_v16 = vld [vmem:[#allocation11 + $0x10] sm:$0xff] }
  0xe2   : > { %v388_v18 = vmul.f32 0.5, %v387_v17 }
  0xe4   : > { %v389_v19 = vsub.f32 1.5, %v388_v18 }
  0xe6   : > { %v390_v20 = vmul.f32 %v1114_v15, %v389_v19 }
  0xe8   : > { %v394_v22 = vsel %vm393_vm4, %v1114_v15, %v390_v20 }
  0xe9   : > { %v395_v23 = vmul.f32 %v394_v22, %v1632_v0 }
  0xeb   : > { %v400_v24 = vmul.f32 %v1110_v21, %v395_v23 }
  0xed   : > { %v401_v25 = vpack.c.bf16 %v400_v24, %v400_v24 }
  0xef   : > { %983 = vmatmul.msk.bf16.vlgmr.msra.gmra.mxu0 %vm372_vm0, %v401_v25 }
 0x16c   : > { %v430_v26 = vpop.f32.mrf.mxu0 }
 0x16d   : > { %v1639_v27 = vpack.c.bf16 %v430_v26, %v430_v26 }
 0x16f   : > { %486 = vrot.lane.b32.xlu2 %v1639_v27, %s1404_s15  ;;  %437 = vrot.lane.b32.xlu0 %v1639_v27, %s1405_s26  ;;  %s1325_s15 = sshra.s32 %s828_s25, 4  ;;  %s1326_s15 = int_to_ptr.hbm [resolvable:$true] %s1325_s15 }
 0x170   : > { %s1327_s28 = scalar_lea.hbm %s1326_s15, 8  ;;  %p1332_p11 = scmp.lt.s32.totalorder %s1326_s15, %s1739_s6 }
 0x171   : > { %p1328_p12 = scmp.ne.s32.totalorder %s1326_s15, %s1327_s28 }
 0x173   : > { %p1329_p9 = pnand %p1328_p12, %p1530_p5 }
 0x174   : > { %v432_v28 = vpop.f32.mrf.mxu0 }
 0x175   : > { %p1330_p6 = pneg %p1329_p9 }
 0x177   : > { %512 = vrot.lane.b32.xlu2 %v1639_v27, %s1406_s19  ;;  %622 = vrot.lane.b32.xlu0 %v1639_v27, %s1407_s8  ;;  %s1331_s19 = scalar_lea.hbm %s1739_s6, 16 }
 0x178   : > { %p1333_p13 = scmp.lt.s32.totalorder %s1331_s19, %s1327_s28 }
 0x17a   : > { %p1334_p0 = por %p1333_p13, %p1332_p11 }
 0x17c   : > { %p1335_p8 = pnand %p1334_p0, %p1330_p6 }
 0x17f   : > { %624 = vrot.lane.b32.xlu2 %v1639_v27, %s1408_s12 }
 0x187   : > { %718 = vrot.lane.b32.xlu2 %v1639_v27, %s1409_s14 }
 0x18f   : > { %716 = vrot.lane.b32.xlu2 %v1639_v27, %s1410_s16 }
 0x1c9   : > { %v487_v29 = vpop.permute.xlu2 %486 }
 0x1ca   : > { %v493_v30 = vsel %vm491_vm5, %v487_v29, 0 }
 0x1cb   : > { %502 = vmatpush.bf16.msra.mxu2 %v493_v30 }
 0x1d1   : > { %v513_v31 = vpop.permute.xlu2 %512 }
 0x1d2   : > { %v518_v32 = vsel %vm439_vm6, %v513_v31, 0 }
 0x1d3   : > { %527 = vmatpush.bf16.xpose.msra.mxu3 %v518_v32 }
 0x1d9   : > { %v625_v33 = vpop.permute.xlu2 %624 }
 0x1da   : > { %v630_v34 = vsel %vm439_vm6, %v625_v33, 0  ;;  %v740_v33 = vld [vmem:[#allocation11 + $0x18] sm:$0xff] }
 0x1db   : > { %639 = vmatpush.bf16.xpose.msrb.mxu3 %v630_v34 }
 0x1e1   : > { %v438_v36 = vpop.permute.xlu0 %437  ;;  %v719_v39 = vpop.permute.xlu2 %718 }
 0x1e2   : > { %v444_v38 = vsel %vm439_vm6, %v438_v36, 0  ;;  %v724_v40 = vsel %vm439_vm6, %v719_v39, 0 }
 0x1e3   : > { %453 = vmatpush.bf16.xpose.msra.mxu1 %v444_v38 }
 0x1e9   : > { %v623_v4 = vpop.permute.xlu0 %622  ;;  %v717_v14 = vpop.permute.xlu2 %716 }
 0x1ea   : > { %984 = vmatmul.msk.bf16.vlgmr.msra.gmra.mxu1 %vm439_vm6, %v1639_v27 }
 0x1eb   : > { %616 = vmatpush.bf16.msrb.mxu1 %v607_v37 }
 0x1ef   : > { %733 = vmatpush.bf16.xpose.msra.mxu1 %v724_v40 }
 0x267   : > { %v455_v42 = vpop.f32.mrf.mxu1 }
 0x268   : > { %v456_v44 = vadd.f32 %v455_v42, %v1658_v41 }
 0x26a   : > { %v460_v45 = vadd.f32 %v459_v43, %v456_v44 }
 0x26c   : > { %v461_v46 = vsel %vm439_vm6, %v460_v45, -inf }
 0x26d   : > { %462 = vmax.xlane.f32.xlu1 %v461_v46 }
 0x26f   : > { %v457_v47 = vpop.f32.mrf.mxu1 }
 0x2e0   : > { %v463_v48 = vpop.xlane.xlu1 %462 }
 0x2e1   : > { %v464_v49 = vsub.f32 %v460_v45, %v463_v48 }
 0x2e3   : > { %v465_v50 = vmul.f32 1.442695, %v464_v49 }
 0x2e5   : > { %1115 = vpow2.f32 %v465_v50 }
 0x2eb   : > { %v1116_v51 = vpop.eup %1115 }
 0x2ec   : > { %v467_v52 = vsel %vm439_vm6, %v1116_v51, 0.0 }
 0x2ed   : > { %468 = vadd.xlane.f32.xlu1 %v467_v52 }
 0x306   : > { %510 = vrot.lane.b32.xlu1 %v1639_v27, %s1411_s27 }
 0x360   : > { %v469_v53 = vpop.xlane.xlu1 %468 }
 0x361   : > { %1117 = vrcp.f32 %v469_v53  ;;  %v481_v57 = vand.u32 2147483648, %v469_v53  ;;  %v479_v59 = vand.u32 2147483647, %v469_v53  ;;  %vm475_vm8 = vweird.f32 %v469_v53 }
 0x363   : > { %v482_v61 = vor.u32 1.1754944e-38, %v481_v57  ;;  %vm480_vm10 = vcmp.eq.f32.partialorder %v479_v59, 8.507059e+37 }
 0x367   : > { %v1118_v54 = vpop.eup %1117 }
 0x368   : > { %v471_v55 = vmul.f32 %v1118_v54, %v469_v53  ;;  %vm476_vm7 = vweird.f32 %v1118_v54 }
 0x369   : > { %vm477_vm9 = vmor %vm475_vm8, %vm476_vm7 }
 0x36a   : > { %v472_v56 = vsub.f32 1.0, %v471_v55 }
 0x36c   : > { %v473_v58 = vmul.f32 %v1118_v54, %v472_v56 }
 0x36e   : > { %v474_v60 = vadd.f32 %v1118_v54, %v473_v58 }
 0x370   : > { %v478_v62 = vsel %vm477_vm9, %v1118_v54, %v474_v60 }
 0x371   : > { %v483_v63 = vsel %vm480_vm10, %v482_v61, %v478_v62 }
 0x372   : > { %v484_v1 = vmul.f32 %v1116_v51, %v483_v63 }
 0x374   : > { %v485_v2 = vpack.c.bf16 %v484_v1, %v484_v1 }
 0x376   : > { %985 = vmatmul.msk.bf16.vlgmr.msra.gmra.mxu2 %vm439_vm6, %v485_v2 }
 0x378   : > { %v511_v3 = vpop.permute.xlu1 %510 }
 0x379   : > { %986 = vmatmul.msk.bf16.vlgmr.msra.gmra.mxu3 %vm439_vm6, %v511_v3 }
 0x389   : > { %990 = vmatmul.msk.bf16.vlgmr.msrb.gmra.mxu3 %vm439_vm6, %v623_v4 }
 0x3f9   : > { %v504_v5 = vpop.f32.mrf.mxu2 }
 0x3fa   : > { %v508_v6 = vpack.c.bf16 %v504_v5, %v504_v5 }
 0x3fc   : > { %v529_v7 = vpop.f32.mrf.mxu3  ;;  %989 = vmatmul.msk.bf16.vlgmr.msrb.gmra.mxu1 %vm439_vm6, %v508_v6 }
 0x3fd   : > { %v530_v9 = vadd.f32 %v529_v7, %v1658_v41 }
 0x3ff   : > { %v535_v10 = vadd.f32 %v534_v8, %v530_v9 }
 0x401   : > { %v506_v11 = vpop.f32.mrf.mxu2  ;;  %v536_v12 = vsel %vm439_vm6, %v535_v10, -inf }
 0x402   : > { %537 = vmax.xlane.f32.xlu0 %v536_v12  ;;  %v583_v12 = vld [vmem:[#allocation8 + $0x4] sm:$0xf] }
 0x404   : > { %v531_v13 = vpop.f32.mrf.mxu3 }
 0x405   : > { %v588_v13 = vsel %vm491_vm5, %v583_v12, 0 }
 0x406   : > { %597 = vmatpush.bf16.msrb.mxu0 %v588_v13 }
 0x40c   : > { %v641_v15 = vpop.f32.mrf.mxu3  ;;  %993 = vmatmul.msk.bf16.vlgmr.msra.gmra.mxu1 %vm439_vm6, %v717_v14 }
 0x40d   : > { %v642_v17 = vadd.f32 %v641_v15, %v1658_v41  ;;  %v695_v15 = vld [vmem:[#allocation8 + $0x8] sm:$0xf] }
 0x40f   : > { %v647_v18 = vadd.f32 %v646_v16, %v642_v17  ;;  %v700_v16 = vsel %vm491_vm5, %v695_v15, 0 }
 0x410   : > { %709 = vmatpush.bf16.msra.mxu0 %v700_v16 }
 0x411   : > { %v648_v19 = vsel %vm439_vm6, %v647_v18, -inf }
 0x412   : > { %649 = vmax.xlane.f32.xlu1 %v648_v19 }
 0x414   : > { %v643_v20 = vpop.f32.mrf.mxu3 }
 0x475   : > { %v538_v21 = vpop.xlane.xlu0 %537 }
 0x476   : > { %v539_v22 = vsub.f32 %v535_v10, %v538_v21 }
 0x478   : > { %v540_v23 = vmul.f32 1.442695, %v539_v22 }
 0x479   : > { %v1673_v24 = vpop.f32.mrf.mxu1 }
 0x47a   : > { %1119 = vpow2.f32 %v540_v23 }
 0x480   : > { %v1120_v25 = vpop.eup %1119 }
 0x481   : > { %v620_v26 = vpop.f32.mrf.mxu1  ;;  %v542_v28 = vsel %vm439_vm6, %v1120_v25, 0.0 }
 0x482   : > { %543 = vadd.xlane.f32.xlu0 %v542_v28 }
 0x485   : > { %v650_v29 = vpop.xlane.xlu1 %649 }
 0x486   : > { %v651_v30 = vsub.f32 %v647_v18, %v650_v29 }
 0x488   : > { %v652_v31 = vmul.f32 1.442695, %v651_v30 }
 0x489   : > { %v735_v32 = vpop.f32.mrf.mxu1 }
 0x48a   : > { %1121 = vpow2.f32 %v652_v31  ;;  %v736_v34 = vadd.f32 %v735_v32, %v1658_v41 }
 0x48c   : > { %v741_v35 = vadd.f32 %v740_v33, %v736_v34 }
 0x48e   : > { %v742_v36 = vsel %vm439_vm6, %v741_v35, -inf }
 0x48f   : > { %743 = vmax.xlane.f32.xlu2 %v742_v36 }
 0x490   : > { %v1122_v37 = vpop.eup %1121 }
 0x491   : > { %v737_v38 = vpop.f32.mrf.mxu1  ;;  %v654_v39 = vsel %vm439_vm6, %v1122_v37, 0.0 }
 0x492   : > { %655 = vadd.xlane.f32.xlu1 %v654_v39  ;;  %v789_v38 = vld [vmem:[#allocation8 + $0xc] sm:$0xf] }
 0x493   : > { %v794_v39 = vsel %vm491_vm5, %v789_v38, 0 }
 0x496   : > { %561 = vrot.lane.b32.xlu0 %v1639_v27, %s1412_s13 }
 0x4ab   : > { %673 = vrot.lane.b32.xlu1 %v1639_v27, %s1413_s10 }
 0x4f5   : > { %v544_v40 = vpop.xlane.xlu0 %543 }
 0x4f6   : > { %1123 = vrcp.f32 %v544_v40  ;;  %v556_v45 = vand.u32 2147483648, %v544_v40  ;;  %v554_v46 = vand.u32 2147483647, %v544_v40  ;;  %vm550_vm12 = vweird.f32 %v544_v40 }
 0x4f8   : > { %v557_v50 = vor.u32 1.1754944e-38, %v556_v45  ;;  %vm555_vm14 = vcmp.eq.f32.partialorder %v554_v46, 8.507059e+37 }
 0x4fc   : > { %v1124_v42 = vpop.eup %1123 }
 0x4fd   : > { %v546_v43 = vmul.f32 %v1124_v42, %v544_v40  ;;  %vm551_vm11 = vweird.f32 %v1124_v42 }
 0x4fe   : > { %vm552_vm13 = vmor %vm550_vm12, %vm551_vm11 }
 0x4ff   : > { %v547_v41 = vsub.f32 1.0, %v546_v43 }
 0x501   : > { %v548_v44 = vmul.f32 %v1124_v42, %v547_v41 }
 0x502   : > { %v744_v47 = vpop.xlane.xlu2 %743 }
 0x503   : > { %v549_v48 = vadd.f32 %v1124_v42, %v548_v44  ;;  %v745_v49 = vsub.f32 %v741_v35, %v744_v47 }
 0x505   : > { %v746_v51 = vmul.f32 1.442695, %v745_v49  ;;  %v656_v52 = vpop.xlane.xlu1 %655  ;;  %v553_v53 = vsel %vm552_vm13, %v1124_v42, %v549_v48 }
 0x506   : > { %1125 = vrcp.f32 %v656_v52  ;;  %v558_v54 = vsel %vm555_vm14, %v557_v50, %v553_v53  ;;  %v668_v3 = vand.u32 2147483648, %v656_v52  ;;  %vm662_vm1 = vweird.f32 %v656_v52 }
 0x507   : > { %1127 = vpow2.f32 %v746_v51  ;;  %v559_v56 = vmul.f32 %v1120_v25, %v558_v54  ;;  %v666_v4 = vand.u32 2147483647, %v656_v52 }
 0x508   : > { %v562_v55 = vpop.permute.xlu0 %561  ;;  %v669_v6 = vor.u32 1.1754944e-38, %v668_v3 }
 0x509   : > { %v567_v57 = vsel %vm491_vm5, %v562_v55, 0  ;;  %v560_v58 = vpack.c.bf16 %v559_v56, %v559_v56  ;;  %vm667_vm3 = vcmp.eq.f32.partialorder %v666_v4, 8.507059e+37 }
 0x50a   : > { %576 = vmatpush.bf16.msrb.mxu2 %v567_v57 }
 0x50c   : > { %v1126_v59 = vpop.eup %1125 }
 0x50d   : > { %v1128_v60 = vpop.eup %1127  ;;  %v658_v61 = vmul.f32 %v1126_v59, %v656_v52  ;;  %987 = vmatmul.msk.bf16.vlgmr.msrb.gmra.mxu2 %vm439_vm6, %v560_v58  ;;  %vm663_vm15 = vweird.f32 %v1126_v59 }
 0x50e   : > { %v748_v62 = vsel %vm439_vm6, %v1128_v60, 0.0  ;;  %vm664_vm2 = vmor %vm662_vm1, %vm663_vm15 }
 0x50f   : > { %v659_v63 = vsub.f32 1.0, %v658_v61  ;;  %749 = vadd.xlane.f32.xlu2 %v748_v62 }
 0x511   : > { %v660_v1 = vmul.f32 %v1126_v59, %v659_v63 }
 0x513   : > { %v661_v2 = vadd.f32 %v1126_v59, %v660_v1 }
 0x515   : > { %v665_v5 = vsel %vm664_vm2, %v1126_v59, %v661_v2 }
 0x516   : > { %v670_v7 = vsel %vm667_vm3, %v669_v6, %v665_v5 }
 0x517   : > { %v671_v8 = vmul.f32 %v1122_v37, %v670_v7 }
 0x519   : > { %v672_v11 = vpack.c.bf16 %v671_v8, %v671_v8 }
 0x51d   : > { %v674_v9 = vpop.permute.xlu1 %673 }
 0x51e   : > { %v679_v10 = vsel %vm491_vm5, %v674_v9, 0 }
 0x51f   : > { %688 = vmatpush.bf16.msra.mxu2 %v679_v10 }
 0x522   : > { %991 = vmatmul.msk.bf16.vlgmr.msra.gmra.mxu2 %vm439_vm6, %v672_v11 }
 0x523   : > { %803 = vmatpush.bf16.msrb.mxu2 %v794_v39 }
 0x527   : > { %767 = vrot.lane.b32.xlu2 %v1639_v27, %s1414_s3 }
 0x582   : > { %v750_v14 = vpop.xlane.xlu2 %749 }
 0x583   : > { %1129 = vrcp.f32 %v750_v14  ;;  %v762_v22 = vand.u32 2147483648, %v750_v14  ;;  %v760_v27 = vand.u32 2147483647, %v750_v14  ;;  %vm756_vm7 = vweird.f32 %v750_v14 }
 0x585   : > { %v763_v28 = vor.u32 1.1754944e-38, %v762_v22  ;;  %vm761_vm9 = vcmp.eq.f32.partialorder %v760_v27, 8.507059e+37 }
 0x589   : > { %v1130_v17 = vpop.eup %1129 }
 0x58a   : > { %v752_v18 = vmul.f32 %v1130_v17, %v750_v14  ;;  %v768_v19 = vpop.permute.xlu2 %767  ;;  %vm757_vm4 = vweird.f32 %v1130_v17 }
 0x58b   : > { %v773_v20 = vsel %vm491_vm5, %v768_v19, 0  ;;  %vm758_vm8 = vmor %vm756_vm7, %vm757_vm4 }
 0x58c   : > { %v753_v21 = vsub.f32 1.0, %v752_v18  ;;  %782 = vmatpush.bf16.msra.mxu3 %v773_v20 }
 0x58e   : > { %v754_v23 = vmul.f32 %v1130_v17, %v753_v21 }
 0x590   : > { %v755_v25 = vadd.f32 %v1130_v17, %v754_v23  ;;  %v578_v26 = vpop.f32.mrf.mxu2 }
 0x591   : > { %v582_v29 = vpack.c.bf16 %v578_v26, %v578_v26 }
 0x592   : > { %v759_v30 = vsel %vm758_vm8, %v1130_v17, %v755_v25 }
 0x593   : > { %v764_v31 = vsel %vm761_vm9, %v763_v28, %v759_v30  ;;  %988 = vmatmul.msk.bf16.vlgmr.msrb.gmra.mxu0 %vm439_vm6, %v582_v29 }
 0x594   : > { %v765_v32 = vmul.f32 %v1128_v60, %v764_v31 }
 0x596   : > { %v766_v33 = vpack.c.bf16 %v765_v32, %v765_v32 }
 0x598   : > { %v580_v34 = vpop.f32.mrf.mxu2  ;;  %994 = vmatmul.msk.bf16.vlgmr.msra.gmra.mxu3 %vm439_vm6, %v766_v33 }
 0x5a5   : > { %v690_v35 = vpop.f32.mrf.mxu2 }
 0x5a6   : > { %v694_v36 = vpack.c.bf16 %v690_v35, %v690_v35 }
 0x5a8   : > { %992 = vmatmul.msk.bf16.vlgmr.msra.gmra.mxu0 %vm439_vm6, %v694_v36 }
 0x5ad   : > { %v692_v37 = vpop.f32.mrf.mxu2 }
 0x610   : > { %v599_v40 = vpop.f32.mrf.mxu0 }
 0x611   : > { %v619_v45 = vadd.f32 %v1673_v24, %v599_v40 }
 0x618   : > { %v601_v42 = vpop.f32.mrf.mxu0 }
 0x61b   : > { %v784_v43 = vpop.f32.mrf.mxu3 }
 0x61c   : > { %v788_v41 = vpack.c.bf16 %v784_v43, %v784_v43 }
 0x61e   : > { %995 = vmatmul.msk.bf16.vlgmr.msrb.gmra.mxu2 %vm439_vm6, %v788_v41 }
 0x623   : > { %v786_v44 = vpop.f32.mrf.mxu3 }
 0x625   : > { %v711_v46 = vpop.f32.mrf.mxu0 }
 0x626   : > { %v715_v47 = vadd.f32 %v711_v46, %v619_v45 }
 0x62d   : > { %v713_v48 = vpop.f32.mrf.mxu0 }
 0x6a1   : > { %v805_v49 = vpop.f32.mrf.mxu2 }
 0x6a2   : > { %v809_v50 = vadd.f32 %v805_v49, %v715_v47 }
 0x6a4   : > { %v810_v51 = vadd.f32 %v809_v50, %v1632_v0 }
 0x6a6   : > { %811 = vst.msk [vmem:[%s368_s0] sm:$0xff] %vm372_vm0, %v810_v51 }
 0x6a7   : > { %1338 = shalt.err (!%p1335_p8)
}
 0x6a8   : > { %1022 = dma.vmem_to_hbm [thread:$0]  (%p1530_p5), %s826_s1, 128, %s828_s25, %s813_s29  }
 0x6a9   : > { %v807_v0 = vpop.f32.mrf.mxu2 }
 0x6aa PF: > { %s839_s2 = sand.u32 1, %s1381_s21   ;;  %p1769_p3 = scmp.ge.s32.totalorder %s1393_s24, 2 }
 0x6ab   : > { %s840_s14 = scalar_lea.sflag [#allocation4], %s839_s2 }
 0x6ac   : > { %p1045_p10 = pnand %p1769_p3, %p1534_p7 }
 0x6ae   : > { %p1046_p2 = pneg %p1045_p10 }
 0x6b0   : > { %1376 = dma.done.wait (%p1046_p2), %s840_s14, 128  }
 0x6b1   : > { %1378 = vsyncadd (%p1046_p2), %s840_s14, 4294967168  ;;  %s1770_s16 = sld [smem:[#allocation19_spill]]  ;;  %p21_p1 = scmp.ge.s32.totalorder %s1504_s17, 4  }
 0x6b2   : > { %s1771_s23 = sld [smem:[#allocation20_spill]]  ;;  %s1772_s21 = smov %s1385_s22 }
 0x6b3   : > { %s1774_s24 = smov %s1504_s17  ;;  %23 = sbr.rel (!%p21_p1) target bundleno = 12 (0xc), region = 119 }
 0x6b7   : > { %s1773_s22 = smov %s1770_s16 }
 0x6b8   :  { %846 = vsyncpa [#allocation3], 1 }
 0x6b9   :  { %848 = vsyncpa [#allocation3 + $0x1], 1 }
 0x6ba   :  { %849 = vsyncpa [#allocation6], 1 }
 0x6bb   :  { %850 = vsyncpa [#allocation9], 1 }
 0x6bc   :  { %851 = vsyncpa [#allocation4], 1 }
 0x6bd   :  { %853 = vsyncpa [#allocation4 + $0x1], 1 }

</bundles_post_ra>
